<compile_context>
chip_gen: v7x
topology: tpu7x:2x2x1
jax: 0.10.0
libtpu: 0.0.40
codegen_flags: <defaults>
</compile_context>

<pallas_src>
from functools import partial

import jax
import jax.numpy as jnp
from jax.experimental import pallas as pl
from jax.experimental.pallas import tpu as pltpu


def _round_up(n: int, m: int) -> int:
    return ((n + m - 1) // m) * m


def simplenet_kernel(params_ref, x_ref, o_ref, *, hidden: int):
    # params_ref: SMEM (3*hidden + 1,) = [w1(hidden), b1(hidden), w2(hidden), b2]
    # x_ref:      VMEM (TR, Cp)  -- batch slab tile
    # o_ref:      VMEM (TR, Cp)
    x = x_ref[...]
    acc = jnp.zeros_like(x)
    # Static unroll over the 10 hidden units; params are SMEM scalars -> cheap splats.
    for j in range(hidden):
        w1_j = params_ref[j]
        b1_j = params_ref[hidden + j]
        w2_j = params_ref[2 * hidden + j]
        acc = acc + w2_j * jnp.maximum(x * w1_j + b1_j, 0.0)
    b2 = params_ref[3 * hidden]
    o_ref[...] = (acc + b2).astype(o_ref.dtype)


def simplenet_forward(x, fc1_w, fc1_b, fc2_w, fc2_b, *,
                      lane_cols=1024, row_tile=256, use_pallas=None):
    """Forward pass of SimpleNet.

    Args (PyTorch nn.Linear conventions):
      x:     (B, 1) float32
      fc1_w: (hidden, 1), fc1_b: (hidden,)
      fc2_w: (1, hidden), fc2_b: (1,)
    Returns: (B, 1) float32
    """
    B = x.shape[0]
    hidden = fc1_w.shape[0]
    x = x.astype(jnp.float32)

    # Small-batch fallback: launch/pad/reshape overhead dominates tiny batches.
    if use_pallas is None:
        use_pallas = B >= (1 << 15)
    if not use_pallas:
        return (jnp.maximum(x @ fc1_w.T + fc1_b, 0.0) @ fc2_w.T + fc2_b
                ).astype(jnp.float32)

    # ---- 2D batch slab geometry -------------------------------------------
    Cp = max(128, min(lane_cols, _round_up(B, 128)))   # lanes (multiple of 128)
    R = -(-B // Cp)                                      # rows needed
    TR = max(8, min(row_tile, _round_up(R, 8)))
    TR -= TR % 8
    Rp = _round_up(R, TR)
    # Prefer >= 2 grid steps so v7x's two TensorCores both get work.
    if Rp // TR < 2 and Rp > 8:
        TR = max(8, _round_up((Rp + 1) // 2, 8))
        Rp = _round_up(R, TR)
    Bp = Rp * Cp

    x_slab = jnp.pad(x.reshape(B), (0, Bp - B)).reshape(Rp, Cp)

    # ---- pack parameters into one small SMEM-resident vector ---------------
    params = jnp.concatenate([
        fc1_w.reshape(hidden).astype(jnp.float32),   # w1
        fc1_b.reshape(hidden).astype(jnp.float32),   # b1
        fc2_w.reshape(hidden).astype(jnp.float32),   # w2
        fc2_b.reshape(1).astype(jnp.float32),        # b2
    ])                                               # (3*hidden + 1,)

    out_slab = pl.pallas_call(
        partial(simplenet_kernel, hidden=hidden),
        out_shape=jax.ShapeDtypeStruct((Rp, Cp), jnp.float32),
        grid=(Rp // TR,),
        in_specs=[
            pl.BlockSpec(memory_space=pltpu.MemorySpace.SMEM),   # params (whole, SMEM)
            pl.BlockSpec((TR, Cp), lambda i: (i, 0)),            # x slab tile
        ],
        out_specs=pl.BlockSpec((TR, Cp), lambda i: (i, 0)),
        compiler_params=pltpu.CompilerParams(
            dimension_semantics=("parallel",),
        ),
    )(params, x_slab)

    # Unpad / restore PyTorch layout (B, 1).  Padded rows hold relu(b1)-derived
    # garbage and are sliced off here.
    return out_slab.reshape(Bp)[:B].reshape(B, 1)


if __name__ == "__main__":
    key = jax.random.PRNGKey(0)
    kx, kw1, kb1, kw2, kb2 = jax.random.split(key, 5)

    B = 3000
    in_features, hidden, out_features = 1, 10, 1

    # Inputs + PyTorch-style uniform(-1/sqrt(fan_in), 1/sqrt(fan_in)) init.
    x = jax.random.normal(kx, (B, in_features), dtype=jnp.float32)
    lim1 = 1.0 / (in_features ** 0.5)
    fc1_w = jax.random.uniform(kw1, (hidden, in_features), minval=-lim1, maxval=lim1,
                               dtype=jnp.float32)
    fc1_b = jax.random.uniform(kb1, (hidden,), minval=-lim1, maxval=lim1,
                               dtype=jnp.float32)
    lim2 = 1.0 / (hidden ** 0.5)
    fc2_w = jax.random.uniform(kw2, (out_features, hidden), minval=-lim2, maxval=lim2,
                               dtype=jnp.float32)
    fc2_b = jax.random.uniform(kb2, (out_features,), minval=-lim2, maxval=lim2,
                               dtype=jnp.float32)

    # Force the Pallas path so the kernel itself is exercised at this small size.
    out = simplenet_forward(x, fc1_w, fc1_b, fc2_w, fc2_b, use_pallas=True)
    out = jax.block_until_ready(out)

    # Reference: same math as the PyTorch forward (x @ W1.T + b1 -> ReLU -> @ W2.T + b2).
    ref = jnp.maximum(x @ fc1_w.T + fc1_b, 0.0) @ fc2_w.T + fc2_b
    assert out.shape == (B, out_features)
    assert jnp.allclose(out, ref, atol=1e-5, rtol=1e-5)

    print("KERNEL_OK")
</pallas_src>

<mosaic_0001>
module attributes {stable_mosaic.version = 11 : i64} {
  func.func @simplenet_kernel(%arg0: i32, %arg1: memref<31xf32, #tpu.memory_space<smem>>, %arg2: memref<8x1024xf32, #tpu.memory_space<vmem>>, %arg3: memref<8x1024xf32, #tpu.memory_space<vmem>>) attributes {dimension_semantics = [#tpu.dimension_semantics<parallel>], iteration_bounds = array<i64: 1>, scalar_prefetch = 0 : i64, scratch_operands = 0 : i64, tpu.core_type = #tpu.core_type<tc>, window_params = [{transform_indices = @transform_0, window_bounds = array<i64: 31>}, {transform_indices = @transform_1, window_bounds = array<i64: 8, 1024>}, {transform_indices = @transform_2, window_bounds = array<i64: 8, 1024>}]} {
    %c0 = arith.constant 0 : index
    %c0_0 = arith.constant 0 : index
    %0 = vector.load %arg2[%c0, %c0_0] : memref<8x1024xf32, #tpu.memory_space<vmem>>, vector<8x1024xf32>
    %cst = arith.constant 0.000000e+00 : f32
    %1 = vector.broadcast %cst : f32 to vector<8x1024xf32>
    %c0_1 = arith.constant 0 : index
    %2 = memref.load %arg1[%c0_1] : memref<31xf32, #tpu.memory_space<smem>>
    %c10 = arith.constant 10 : index
    %3 = memref.load %arg1[%c10] : memref<31xf32, #tpu.memory_space<smem>>
    %c20 = arith.constant 20 : index
    %4 = memref.load %arg1[%c20] : memref<31xf32, #tpu.memory_space<smem>>
    %5 = vector.broadcast %2 : f32 to vector<8x1024xf32>
    %6 = arith.mulf %0, %5 : vector<8x1024xf32>
    %7 = vector.broadcast %3 : f32 to vector<8x1024xf32>
    %8 = arith.addf %6, %7 : vector<8x1024xf32>
    %cst_2 = arith.constant 0.000000e+00 : f32
    %9 = vector.broadcast %cst_2 : f32 to vector<8x1024xf32>
    %10 = arith.maximumf %8, %9 : vector<8x1024xf32>
    %11 = vector.broadcast %4 : f32 to vector<8x1024xf32>
    %12 = arith.mulf %11, %10 : vector<8x1024xf32>
    %13 = arith.addf %1, %12 : vector<8x1024xf32>
    %c1 = arith.constant 1 : index
    %14 = memref.load %arg1[%c1] : memref<31xf32, #tpu.memory_space<smem>>
    %c11 = arith.constant 11 : index
    %15 = memref.load %arg1[%c11] : memref<31xf32, #tpu.memory_space<smem>>
    %c21 = arith.constant 21 : index
    %16 = memref.load %arg1[%c21] : memref<31xf32, #tpu.memory_space<smem>>
    %17 = vector.broadcast %14 : f32 to vector<8x1024xf32>
    %18 = arith.mulf %0, %17 : vector<8x1024xf32>
    %19 = vector.broadcast %15 : f32 to vector<8x1024xf32>
    %20 = arith.addf %18, %19 : vector<8x1024xf32>
    %cst_3 = arith.constant 0.000000e+00 : f32
    %21 = vector.broadcast %cst_3 : f32 to vector<8x1024xf32>
    %22 = arith.maximumf %20, %21 : vector<8x1024xf32>
    %23 = vector.broadcast %16 : f32 to vector<8x1024xf32>
    %24 = arith.mulf %23, %22 : vector<8x1024xf32>
    %25 = arith.addf %13, %24 : vector<8x1024xf32>
    %c2 = arith.constant 2 : index
    %26 = memref.load %arg1[%c2] : memref<31xf32, #tpu.memory_space<smem>>
    %c12 = arith.constant 12 : index
    %27 = memref.load %arg1[%c12] : memref<31xf32, #tpu.memory_space<smem>>
    %c22 = arith.constant 22 : index
    %28 = memref.load %arg1[%c22] : memref<31xf32, #tpu.memory_space<smem>>
    %29 = vector.broadcast %26 : f32 to vector<8x1024xf32>
    %30 = arith.mulf %0, %29 : vector<8x1024xf32>
    %31 = vector.broadcast %27 : f32 to vector<8x1024xf32>
    %32 = arith.addf %30, %31 : vector<8x1024xf32>
    %cst_4 = arith.constant 0.000000e+00 : f32
    %33 = vector.broadcast %cst_4 : f32 to vector<8x1024xf32>
    %34 = arith.maximumf %32, %33 : vector<8x1024xf32>
    %35 = vector.broadcast %28 : f32 to vector<8x1024xf32>
    %36 = arith.mulf %35, %34 : vector<8x1024xf32>
    %37 = arith.addf %25, %36 : vector<8x1024xf32>
    %c3 = arith.constant 3 : index
    %38 = memref.load %arg1[%c3] : memref<31xf32, #tpu.memory_space<smem>>
    %c13 = arith.constant 13 : index
    %39 = memref.load %arg1[%c13] : memref<31xf32, #tpu.memory_space<smem>>
    %c23 = arith.constant 23 : index
    %40 = memref.load %arg1[%c23] : memref<31xf32, #tpu.memory_space<smem>>
    %41 = vector.broadcast %38 : f32 to vector<8x1024xf32>
    %42 = arith.mulf %0, %41 : vector<8x1024xf32>
    %43 = vector.broadcast %39 : f32 to vector<8x1024xf32>
    %44 = arith.addf %42, %43 : vector<8x1024xf32>
    %cst_5 = arith.constant 0.000000e+00 : f32
    %45 = vector.broadcast %cst_5 : f32 to vector<8x1024xf32>
    %46 = arith.maximumf %44, %45 : vector<8x1024xf32>
    %47 = vector.broadcast %40 : f32 to vector<8x1024xf32>
    %48 = arith.mulf %47, %46 : vector<8x1024xf32>
    %49 = arith.addf %37, %48 : vector<8x1024xf32>
    %c4 = arith.constant 4 : index
    %50 = memref.load %arg1[%c4] : memref<31xf32, #tpu.memory_space<smem>>
    %c14 = arith.constant 14 : index
    %51 = memref.load %arg1[%c14] : memref<31xf32, #tpu.memory_space<smem>>
    %c24 = arith.constant 24 : index
    %52 = memref.load %arg1[%c24] : memref<31xf32, #tpu.memory_space<smem>>
    %53 = vector.broadcast %50 : f32 to vector<8x1024xf32>
    %54 = arith.mulf %0, %53 : vector<8x1024xf32>
    %55 = vector.broadcast %51 : f32 to vector<8x1024xf32>
    %56 = arith.addf %54, %55 : vector<8x1024xf32>
    %cst_6 = arith.constant 0.000000e+00 : f32
    %57 = vector.broadcast %cst_6 : f32 to vector<8x1024xf32>
    %58 = arith.maximumf %56, %57 : vector<8x1024xf32>
    %59 = vector.broadcast %52 : f32 to vector<8x1024xf32>
    %60 = arith.mulf %59, %58 : vector<8x1024xf32>
    %61 = arith.addf %49, %60 : vector<8x1024xf32>
    %c5 = arith.constant 5 : index
    %62 = memref.load %arg1[%c5] : memref<31xf32, #tpu.memory_space<smem>>
    %c15 = arith.constant 15 : index
    %63 = memref.load %arg1[%c15] : memref<31xf32, #tpu.memory_space<smem>>
    %c25 = arith.constant 25 : index
    %64 = memref.load %arg1[%c25] : memref<31xf32, #tpu.memory_space<smem>>
    %65 = vector.broadcast %62 : f32 to vector<8x1024xf32>
    %66 = arith.mulf %0, %65 : vector<8x1024xf32>
    %67 = vector.broadcast %63 : f32 to vector<8x1024xf32>
    %68 = arith.addf %66, %67 : vector<8x1024xf32>
    %cst_7 = arith.constant 0.000000e+00 : f32
    %69 = vector.broadcast %cst_7 : f32 to vector<8x1024xf32>
    %70 = arith.maximumf %68, %69 : vector<8x1024xf32>
    %71 = vector.broadcast %64 : f32 to vector<8x1024xf32>
    %72 = arith.mulf %71, %70 : vector<8x1024xf32>
    %73 = arith.addf %61, %72 : vector<8x1024xf32>
    %c6 = arith.constant 6 : index
    %74 = memref.load %arg1[%c6] : memref<31xf32, #tpu.memory_space<smem>>
    %c16 = arith.constant 16 : index
    %75 = memref.load %arg1[%c16] : memref<31xf32, #tpu.memory_space<smem>>
    %c26 = arith.constant 26 : index
    %76 = memref.load %arg1[%c26] : memref<31xf32, #tpu.memory_space<smem>>
    %77 = vector.broadcast %74 : f32 to vector<8x1024xf32>
    %78 = arith.mulf %0, %77 : vector<8x1024xf32>
    %79 = vector.broadcast %75 : f32 to vector<8x1024xf32>
    %80 = arith.addf %78, %79 : vector<8x1024xf32>
    %cst_8 = arith.constant 0.000000e+00 : f32
    %81 = vector.broadcast %cst_8 : f32 to vector<8x1024xf32>
    %82 = arith.maximumf %80, %81 : vector<8x1024xf32>
    %83 = vector.broadcast %76 : f32 to vector<8x1024xf32>
    %84 = arith.mulf %83, %82 : vector<8x1024xf32>
    %85 = arith.addf %73, %84 : vector<8x1024xf32>
    %c7 = arith.constant 7 : index
    %86 = memref.load %arg1[%c7] : memref<31xf32, #tpu.memory_space<smem>>
    %c17 = arith.constant 17 : index
    %87 = memref.load %arg1[%c17] : memref<31xf32, #tpu.memory_space<smem>>
    %c27 = arith.constant 27 : index
    %88 = memref.load %arg1[%c27] : memref<31xf32, #tpu.memory_space<smem>>
    %89 = vector.broadcast %86 : f32 to vector<8x1024xf32>
    %90 = arith.mulf %0, %89 : vector<8x1024xf32>
    %91 = vector.broadcast %87 : f32 to vector<8x1024xf32>
    %92 = arith.addf %90, %91 : vector<8x1024xf32>
    %cst_9 = arith.constant 0.000000e+00 : f32
    %93 = vector.broadcast %cst_9 : f32 to vector<8x1024xf32>
    %94 = arith.maximumf %92, %93 : vector<8x1024xf32>
    %95 = vector.broadcast %88 : f32 to vector<8x1024xf32>
    %96 = arith.mulf %95, %94 : vector<8x1024xf32>
    %97 = arith.addf %85, %96 : vector<8x1024xf32>
    %c8 = arith.constant 8 : index
    %98 = memref.load %arg1[%c8] : memref<31xf32, #tpu.memory_space<smem>>
    %c18 = arith.constant 18 : index
    %99 = memref.load %arg1[%c18] : memref<31xf32, #tpu.memory_space<smem>>
    %c28 = arith.constant 28 : index
    %100 = memref.load %arg1[%c28] : memref<31xf32, #tpu.memory_space<smem>>
    %101 = vector.broadcast %98 : f32 to vector<8x1024xf32>
    %102 = arith.mulf %0, %101 : vector<8x1024xf32>
    %103 = vector.broadcast %99 : f32 to vector<8x1024xf32>
    %104 = arith.addf %102, %103 : vector<8x1024xf32>
    %cst_10 = arith.constant 0.000000e+00 : f32
    %105 = vector.broadcast %cst_10 : f32 to vector<8x1024xf32>
    %106 = arith.maximumf %104, %105 : vector<8x1024xf32>
    %107 = vector.broadcast %100 : f32 to vector<8x1024xf32>
    %108 = arith.mulf %107, %106 : vector<8x1024xf32>
    %109 = arith.addf %97, %108 : vector<8x1024xf32>
    %c9 = arith.constant 9 : index
    %110 = memref.load %arg1[%c9] : memref<31xf32, #tpu.memory_space<smem>>
    %c19 = arith.constant 19 : index
    %111 = memref.load %arg1[%c19] : memref<31xf32, #tpu.memory_space<smem>>
    %c29 = arith.constant 29 : index
    %112 = memref.load %arg1[%c29] : memref<31xf32, #tpu.memory_space<smem>>
    %113 = vector.broadcast %110 : f32 to vector<8x1024xf32>
    %114 = arith.mulf %0, %113 : vector<8x1024xf32>
    %115 = vector.broadcast %111 : f32 to vector<8x1024xf32>
    %116 = arith.addf %114, %115 : vector<8x1024xf32>
    %cst_11 = arith.constant 0.000000e+00 : f32
    %117 = vector.broadcast %cst_11 : f32 to vector<8x1024xf32>
    %118 = arith.maximumf %116, %117 : vector<8x1024xf32>
    %119 = vector.broadcast %112 : f32 to vector<8x1024xf32>
    %120 = arith.mulf %119, %118 : vector<8x1024xf32>
    %121 = arith.addf %109, %120 : vector<8x1024xf32>
    %c30 = arith.constant 30 : index
    %122 = memref.load %arg1[%c30] : memref<31xf32, #tpu.memory_space<smem>>
    %123 = vector.broadcast %122 : f32 to vector<8x1024xf32>
    %124 = arith.addf %121, %123 : vector<8x1024xf32>
    %c0_12 = arith.constant 0 : index
    %c0_13 = arith.constant 0 : index
    %125 = vector.load %arg3[%c0_12, %c0_13] : memref<8x1024xf32, #tpu.memory_space<vmem>>, vector<8x1024xf32>
    tpu.vector_store %arg3[%c0_12, %c0_13], %124 {strides = array<i32>} : memref<8x1024xf32, #tpu.memory_space<vmem>>, vector<8x1024xf32>,
    return
  }
  func.func @transform_0(%arg0: i32) -> i32 {
    %c0_i32 = arith.constant 0 : i32
    %c0_i32_0 = arith.constant 0 : i32
    return %c0_i32 : i32
  }
  func.func @transform_1(%arg0: i32) -> (i32, i32) {
    %c0_i32 = arith.constant 0 : i32
    %c0_i32_0 = arith.constant 0 : i32
    return %arg0, %c0_i32 : i32, i32
  }
  func.func @transform_2(%arg0: i32) -> (i32, i32) {
    %c0_i32 = arith.constant 0 : i32
    %c0_i32_0 = arith.constant 0 : i32
    return %arg0, %c0_i32 : i32, i32
  }
}

</mosaic_0001>

<bundles_post_ra>
// kernel: tpu_custom_call.1
= control target key start
LH: loop header
LB: loop body
LE: loop exit
PB: predicated region body
PF: predicated region fallthrough
CT: control target
= control target key end

     0   :  { %7 = vsyncpa [#allocation5], 0  ;;  %s1099_s0 = inlined_call_operand.hbm [shape: f32[31], index: 0, kind: input, shape index: {}]   ;;  %s1100_s1 = inlined_call_operand.hbm [shape: f32[8,1024], index: 1, kind: input, shape index: {}]   ;;  %s1101_s2 = inlined_call_operand.hbm [shape: f32[8,1024], index: 2, kind: output, shape index: {}]  }
   0x1   :  { %8 = vsyncpa [#allocation3], 0 }
   0x2   :  { %9 = vsyncpa [#allocation4], 0  ;;  %s570_s11 = scalar_lea.hbm %s1099_s0, 16 }
   0x3   :  { %p571_p0 = scmp.ne.s32.totalorder %s1099_s0, %s570_s11  ;;  %p574_p1 = scmp.lt.u32.totalorder %s570_s11, %s1099_s0 }
   0x5   :  { %p576_p2 = pnand %p574_p1, %p571_p0 }
   0x7   :  { %579 = shalt.err (!%p576_p2)
}
   0x8   :  { %s630_s16 = smov [#allocation2]   ;;  %s631_s19 = smov [#allocation6]  }
   0x9   :  { %17 = dma.hbm_to_smem %s1099_s0, 16, %s630_s16, [#allocation5]  }
   0xa   :  { %s24_s20 = sshll.u32 %s631_s19, 4  ;;  %s580_s23 = scalar_lea.hbm %s1100_s1, 1024  ;;  %s25_s20 = int_to_ptr.vmem [resolvable:$true] %s24_s20 }
   0xb   :  { %p581_p3 = scmp.ne.s32.totalorder %s1100_s1, %s580_s23  ;;  %p584_p4 = scmp.lt.u32.totalorder %s580_s23, %s1100_s1 }
   0xd   :  { %p586_p5 = pnand %p584_p4, %p581_p3 }
   0xf   :  { %589 = shalt.err (!%p586_p5)
}
  0x10   :  { %s590_s28 = scalar_lea.vmem %s25_s20, 1024  ;;  %p595_p7 = scmp.lt.s32.totalorder %s25_s20, %s25_s20 }
  0x11   :  { %p591_p6 = scmp.ne.s32.totalorder %s25_s20, %s590_s28  ;;  %p596_p8 = scmp.lt.s32.totalorder %s590_s28, %s590_s28 }
  0x13   :  { %p597_p9 = por %p596_p8, %p595_p7 }
  0x15   :  { %p598_p10 = pnand %p597_p9, %p591_p6 }
  0x17   :  { %601 = shalt.err (!%p598_p10)
}
  0x18   :  { %27 = dma.hbm_to_vmem [thread:$0]  %s1100_s1, 1024, %s25_s20, [#allocation3]  }
  0x19   :  { %624 = dma.done.wait [#allocation5], 16  }
  0x1a   :  { %625 = vsyncadd [#allocation5], 4294967280 }
  0x1b   :  { %626 = dma.done.wait [#allocation3], 1024  }
  0x1c   :  { %627 = vsyncadd [#allocation3], 4294966272 }
  0x1d   :  { %34 = sfence }
  0x1e   :  { %s43_s30 = sld [smem:[#allocation2]]  ;;  %s537_s3 = sld [smem:[#allocation2 + $0xa]]  ;;  %v672_v0 = vld [vmem:[#allocation6] sm:$0xff]  ;;  %v674_v1 = vld [vmem:[#allocation6 + $0x8] sm:$0xff] }
  0x1f   :  { %s538_s4 = sld [smem:[#allocation2 + $0x14]]  ;;  %s539_s5 = sld [smem:[#allocation2 + $0x1]] }
  0x20   :  { %s540_s6 = sld [smem:[#allocation2 + $0xb]]  ;;  %s541_s7 = sld [smem:[#allocation2 + $0x15]] }
  0x21   :  { %s542_s8 = sld [smem:[#allocation2 + $0x2]]  ;;  %s543_s9 = sld [smem:[#allocation2 + $0xc]] }
  0x22   :  { %s544_s10 = sld [smem:[#allocation2 + $0x16]]  ;;  %s545_s11 = sld [smem:[#allocation2 + $0x3]] }
  0x23   :  { %s676_s1 = sld [smem:[#allocation2 + $0xd]]  ;;  %s678_s12 = sld [smem:[#allocation2 + $0x17]] }
  0x24   :  { %v680_v2 = vstv %s43_s30  ;;  %v682_v3 = vstv %s537_s3  ;;  %s684_s13 = sld [smem:[#allocation2 + $0x4]]  ;;  %s686_s14 = sld [smem:[#allocation2 + $0xe]] }
  0x25   :  { %v47_v4 = vmul.f32 %v680_v2, %v672_v0  ;;  %v690_v5 = vstv %s538_s4  ;;  %v692_v6 = vstv %s539_s5  ;;  %s694_s15 = sld [smem:[#allocation2 + $0x18]]  ;;  %s696_s16 = sld [smem:[#allocation2 + $0x5]]  ;;  %v48_v7 = vmul.f32 %v680_v2, %v674_v1 }
  0x26   :  { %v93_v8 = vmul.f32 %v692_v6, %v672_v0  ;;  %v702_v9 = vstv %s540_s6  ;;  %v704_v10 = vstv %s541_s7  ;;  %s706_s17 = sld [smem:[#allocation2 + $0xf]]  ;;  %s708_s18 = sld [smem:[#allocation2 + $0x19]]  ;;  %v712_v11 = vmul.f32 %v692_v6, %v674_v1 }
  0x27   :  { %v56_v12 = vadd.f32 %v682_v3, %v47_v4  ;;  %v715_v13 = vstv %s542_s8  ;;  %v717_v14 = vstv %s543_s9  ;;  %s719_s19 = sld [smem:[#allocation2 + $0x6]]  ;;  %s721_s20 = sld [smem:[#allocation2 + $0x10]]  ;;  %v724_v15 = vadd.f32 %v682_v3, %v48_v7 }
  0x28   :  { %v102_v16 = vadd.f32 %v702_v9, %v93_v8  ;;  %v139_v17 = vmul.f32 %v715_v13, %v672_v0  ;;  %v729_v18 = vstv %s544_s10  ;;  %v731_v19 = vstv %s545_s11  ;;  %s733_s21 = sld [smem:[#allocation2 + $0x1a]]  ;;  %s735_s22 = sld [smem:[#allocation2 + $0x7]] }
  0x29   :  { %v64_v20 = vmax.f32 %v56_v12, 0.0  ;;  %v185_v21 = vmul.f32 %v731_v19, %v672_v0  ;;  %v740_v22 = vstv %s676_s1  ;;  %v743_v23 = vstv %s678_s12  ;;  %s745_s23 = sld [smem:[#allocation2 + $0x11]]  ;;  %s747_s24 = sld [smem:[#allocation2 + $0x1b]] }
  0x2a   :  { %v110_v24 = vmax.f32 %v102_v16, 0.0  ;;  %v148_v25 = vadd.f32 %v717_v14, %v139_v17  ;;  %v751_v26 = vstv %s684_s13  ;;  %v754_v27 = vstv %s686_s14  ;;  %s756_s25 = sld [smem:[#allocation2 + $0x8]]  ;;  %s758_s26 = sld [smem:[#allocation2 + $0x12]] }
  0x2b   :  { %v73_v28 = vmul.f32 %v690_v5, %v64_v20  ;;  %v194_v29 = vadd.f32 %v740_v22, %v185_v21  ;;  %v231_v30 = vmul.f32 %v751_v26, %v672_v0  ;;  %v765_v31 = vstv %s694_s15  ;;  %s767_s27 = sld [smem:[#allocation2 + $0x1c]]  ;;  %s776_s28 = sld [smem:[#allocation2 + $0x9]] }
  0x2c   :  { %v119_v32 = vmul.f32 %v704_v10, %v110_v24  ;;  %v156_v33 = vmax.f32 %v148_v25, 0.0  ;;  %v771_v34 = vstv %s696_s16  ;;  %v774_v35 = vstv %s706_s17  ;;  %s778_s0 = sld [smem:[#allocation2 + $0x13]]  ;;  %s793_s29 = sld [smem:[#allocation2 + $0x1d]] }
  0x2d   :  { %v202_v36 = vmax.f32 %v194_v29, 0.0  ;;  %v240_v37 = vadd.f32 %v754_v27, %v231_v30  ;;  %v277_v38 = vmul.f32 %v771_v34, %v672_v0  ;;  %v784_v39 = vstv %s708_s18  ;;  %s795_s30 = sld [smem:[#allocation2 + $0x1e]]  ;;  %s632_s3 = smov [#allocation7]  }
  0x2e   :  { %v127_v40 = vadd.f32 %v119_v32, %v73_v28  ;;  %v165_v41 = vmul.f32 %v729_v18, %v156_v33  ;;  %v788_v42 = vstv %s719_s19  ;;  %v791_v43 = vstv %s721_s20  ;;  %s527_s4 = sshll.u32 %s632_s3, 4  ;;  %s528_s4 = int_to_ptr.vmem [resolvable:$true] %s527_s4 }
  0x2f   :  { %v211_v44 = vmul.f32 %v743_v23, %v202_v36  ;;  %v248_v45 = vmax.f32 %v240_v37, 0.0  ;;  %v286_v46 = vadd.f32 %v774_v35, %v277_v38  ;;  %v323_v47 = vmul.f32 %v788_v42, %v672_v0  ;;  %s602_s5 = scalar_lea.vmem %s528_s4, 1024  ;;  %p607_p12 = scmp.lt.s32.totalorder %s528_s4, %s528_s4 }
  0x30   :  { %v173_v48 = vadd.f32 %v165_v41, %v127_v40  ;;  %v802_v49 = vstv %s733_s21  ;;  %v805_v50 = vstv %s735_s22  ;;  %v808_v51 = vstv %s745_s23  ;;  %p603_p11 = scmp.ne.s32.totalorder %s528_s4, %s602_s5  ;;  %p608_p13 = scmp.lt.s32.totalorder %s602_s5, %s602_s5 }
  0x31   :  { %v257_v52 = vmul.f32 %v765_v31, %v248_v45  ;;  %v294_v53 = vmax.f32 %v286_v46, 0.0  ;;  %v332_v54 = vadd.f32 %v791_v43, %v323_v47  ;;  %v369_v55 = vmul.f32 %v805_v50, %v672_v0 }
  0x32   :  { %v219_v56 = vadd.f32 %v211_v44, %v173_v48  ;;  %v815_v57 = vstv %s747_s24  ;;  %v818_v58 = vstv %s756_s25  ;;  %v821_v59 = vstv %s758_s26  ;;  %p609_p0 = por %p608_p13, %p607_p12 }
  0x33   :  { %v303_v60 = vmul.f32 %v784_v39, %v294_v53  ;;  %v340_v61 = vmax.f32 %v332_v54, 0.0  ;;  %v378_v62 = vadd.f32 %v808_v51, %v369_v55  ;;  %v415_v63 = vmul.f32 %v818_v58, %v672_v0 }
  0x34   :  { %v265_v4 = vadd.f32 %v257_v52, %v219_v56  ;;  %v828_v7 = vstv %s767_s27  ;;  %v831_v8 = vstv %s776_s28  ;;  %v834_v12 = vstv %s778_s0  ;;  %p610_p1 = pnand %p609_p0, %p603_p11 }
  0x35   :  { %v349_v16 = vmul.f32 %v802_v49, %v340_v61  ;;  %v386_v17 = vmax.f32 %v378_v62, 0.0  ;;  %v424_v20 = vadd.f32 %v821_v59, %v415_v63  ;;  %v461_v21 = vmul.f32 %v831_v8, %v672_v0 }
  0x36   :  { %v311_v24 = vadd.f32 %v303_v60, %v265_v4  ;;  %v841_v25 = vstv %s793_s29  ;;  %v844_v28 = vstv %s795_s30  ;;  %v65_v29 = vmax.f32 %v724_v15, 0.0 }
  0x37   :  { %v395_v30 = vmul.f32 %v815_v57, %v386_v17  ;;  %v432_v32 = vmax.f32 %v424_v20, 0.0  ;;  %v470_v33 = vadd.f32 %v834_v12, %v461_v21  ;;  %v103_v36 = vadd.f32 %v702_v9, %v712_v11 }
  0x38   :  { %v357_v37 = vadd.f32 %v349_v16, %v311_v24  ;;  %v74_v38 = vmul.f32 %v690_v5, %v65_v29  ;;  %v140_v0 = vmul.f32 %v715_v13, %v674_v1  ;;  %v186_v40 = vmul.f32 %v731_v19, %v674_v1 }
  0x39   :  { %v441_v41 = vmul.f32 %v828_v7, %v432_v32  ;;  %v478_v15 = vmax.f32 %v470_v33, 0.0  ;;  %v111_v44 = vmax.f32 %v103_v36, 0.0  ;;  %v232_v45 = vmul.f32 %v751_v26, %v674_v1 }
  0x3a   :  { %v403_v46 = vadd.f32 %v395_v30, %v357_v37  ;;  %v149_v47 = vadd.f32 %v717_v14, %v140_v0  ;;  %v195_v11 = vadd.f32 %v740_v22, %v186_v40  ;;  %v278_v48 = vmul.f32 %v771_v34, %v674_v1  ;;  %v37_v30 = vld [vmem:[#allocation6 + $0x10] sm:$0xff] }
  0x3b   :  { %v487_v52 = vmul.f32 %v841_v25, %v478_v15  ;;  %v120_v53 = vmul.f32 %v704_v10, %v111_v44  ;;  %v241_v54 = vadd.f32 %v754_v27, %v232_v45  ;;  %v324_v55 = vmul.f32 %v788_v42, %v674_v1 }
  0x3c   :  { %v449_v56 = vadd.f32 %v441_v41, %v403_v46  ;;  %v157_v60 = vmax.f32 %v149_v47, 0.0  ;;  %v203_v61 = vmax.f32 %v195_v11, 0.0  ;;  %v287_v62 = vadd.f32 %v774_v35, %v278_v48 }
  0x3d   :  { %v128_v63 = vadd.f32 %v120_v53, %v74_v38  ;;  %v249_v4 = vmax.f32 %v241_v54, 0.0  ;;  %v333_v16 = vadd.f32 %v791_v43, %v324_v55  ;;  %v370_v17 = vmul.f32 %v805_v50, %v674_v1 }
  0x3e   :  { %v495_v20 = vadd.f32 %v487_v52, %v449_v56  ;;  %v166_v21 = vmul.f32 %v729_v18, %v157_v60  ;;  %v212_v24 = vmul.f32 %v743_v23, %v203_v61  ;;  %v295_v29 = vmax.f32 %v287_v62, 0.0 }
  0x3f   :  { %v258_v32 = vmul.f32 %v765_v31, %v249_v4  ;;  %v341_v33 = vmax.f32 %v333_v16, 0.0  ;;  %v379_v36 = vadd.f32 %v808_v51, %v370_v17  ;;  %v416_v37 = vmul.f32 %v818_v58, %v674_v1 }
  0x40   :  { %v505_v38 = vadd.f32 %v844_v28, %v495_v20  ;;  %v174_v0 = vadd.f32 %v166_v21, %v128_v63  ;;  %v304_v40 = vmul.f32 %v784_v39, %v295_v29  ;;  %v462_v41 = vmul.f32 %v831_v8, %v674_v1 }
  0x41   :  { %v350_v15 = vmul.f32 %v802_v49, %v341_v33  ;;  %v387_v44 = vmax.f32 %v379_v36, 0.0  ;;  %v425_v45 = vadd.f32 %v821_v59, %v416_v37  ;;  %v49_v46 = vmul.f32 %v680_v2, %v37_v30 }
  0x42   :  { %513 = vst [vmem:[#allocation7] sm:$0xff] %v505_v38  ;;  %v220_v47 = vadd.f32 %v212_v24, %v174_v0  ;;  %v471_v11 = vadd.f32 %v834_v12, %v462_v41  ;;  %v95_v48 = vmul.f32 %v692_v6, %v37_v30  ;;  %v141_v52 = vmul.f32 %v715_v13, %v37_v30 }
  0x43   :  { %v396_v53 = vmul.f32 %v815_v57, %v387_v44  ;;  %v433_v54 = vmax.f32 %v425_v45, 0.0  ;;  %v58_v1 = vadd.f32 %v682_v3, %v49_v46  ;;  %v187_v55 = vmul.f32 %v731_v19, %v37_v30 }
  0x44   :  { %v266_v56 = vadd.f32 %v258_v32, %v220_v47  ;;  %v479_v60 = vmax.f32 %v471_v11, 0.0  ;;  %v104_v61 = vadd.f32 %v702_v9, %v95_v48  ;;  %v150_v62 = vadd.f32 %v717_v14, %v141_v52 }
  0x45   :  { %v442_v63 = vmul.f32 %v828_v7, %v433_v54  ;;  %v66_v4 = vmax.f32 %v58_v1, 0.0  ;;  %v196_v16 = vadd.f32 %v740_v22, %v187_v55  ;;  %v233_v17 = vmul.f32 %v751_v26, %v37_v30 }
  0x46   :  { %v312_v20 = vadd.f32 %v304_v40, %v266_v56  ;;  %v488_v21 = vmul.f32 %v841_v25, %v479_v60  ;;  %v112_v24 = vmax.f32 %v104_v61, 0.0  ;;  %v158_v29 = vmax.f32 %v150_v62, 0.0 }
  0x47   :  { %v75_v33 = vmul.f32 %v690_v5, %v66_v4  ;;  %v204_v32 = vmax.f32 %v196_v16, 0.0  ;;  %v242_v36 = vadd.f32 %v754_v27, %v233_v17  ;;  %v279_v37 = vmul.f32 %v771_v34, %v37_v30 }
  0x48   :  { %v358_v38 = vadd.f32 %v350_v15, %v312_v20  ;;  %v121_v0 = vmul.f32 %v704_v10, %v112_v24  ;;  %v167_v41 = vmul.f32 %v729_v18, %v158_v29  ;;  %v325_v44 = vmul.f32 %v788_v42, %v37_v30  ;;  %v38_v15 = vld [vmem:[#allocation6 + $0x18] sm:$0xff] }
  0x49   :  { %v213_v40 = vmul.f32 %v743_v23, %v204_v32  ;;  %v250_v45 = vmax.f32 %v242_v36, 0.0  ;;  %v288_v46 = vadd.f32 %v774_v35, %v279_v37  ;;  %v371_v47 = vmul.f32 %v805_v50, %v37_v30 }
  0x4a   :  { %v404_v11 = vadd.f32 %v396_v53, %v358_v38  ;;  %v129_v48 = vadd.f32 %v121_v0, %v75_v33  ;;  %v334_v52 = vadd.f32 %v791_v43, %v325_v44  ;;  %v417_v54 = vmul.f32 %v818_v58, %v37_v30 }
  0x4b   :  { %v259_v1 = vmul.f32 %v765_v31, %v250_v45  ;;  %v296_v55 = vmax.f32 %v288_v46, 0.0  ;;  %v380_v56 = vadd.f32 %v808_v51, %v371_v47  ;;  %v463_v60 = vmul.f32 %v831_v8, %v37_v30 }
  0x4c   :  { %v450_v61 = vadd.f32 %v442_v63, %v404_v11  ;;  %v175_v62 = vadd.f32 %v167_v41, %v129_v48  ;;  %v342_v4 = vmax.f32 %v334_v52, 0.0  ;;  %v426_v16 = vadd.f32 %v821_v59, %v417_v54 }
  0x4d   :  { %v305_v53 = vmul.f32 %v784_v39, %v296_v55  ;;  %v388_v17 = vmax.f32 %v380_v56, 0.0  ;;  %v472_v20 = vadd.f32 %v834_v12, %v463_v60  ;;  %v50_v24 = vmul.f32 %v680_v2, %v38_v15 }
  0x4e   :  { %v496_v29 = vadd.f32 %v488_v21, %v450_v61  ;;  %v221_v33 = vadd.f32 %v213_v40, %v175_v62  ;;  %v351_v32 = vmul.f32 %v802_v49, %v342_v4  ;;  %v434_v36 = vmax.f32 %v426_v16, 0.0 }
  0x4f   :  { %v397_v37 = vmul.f32 %v815_v57, %v388_v17  ;;  %v480_v30 = vmax.f32 %v472_v20, 0.0  ;;  %v59_v63 = vadd.f32 %v682_v3, %v50_v24  ;;  %v96_v38 = vmul.f32 %v692_v6, %v38_v15 }
  0x50   :  { %v506_v0 = vadd.f32 %v844_v28, %v496_v29  ;;  %v267_v41 = vadd.f32 %v259_v1, %v221_v33  ;;  %v443_v44 = vmul.f32 %v828_v7, %v434_v36  ;;  %v142_v45 = vmul.f32 %v715_v13, %v38_v15 }
  0x51   :  { %v489_v21 = vmul.f32 %v841_v25, %v480_v30  ;;  %v67_v40 = vmax.f32 %v59_v63, 0.0  ;;  %v105_v46 = vadd.f32 %v702_v9, %v96_v38  ;;  %v188_v47 = vmul.f32 %v731_v19, %v38_v15 }
  0x52   :  { %514 = vst [vmem:[#allocation7 + $0x8] sm:$0xff] %v506_v0  ;;  %v313_v11 = vadd.f32 %v305_v53, %v267_v41  ;;  %v151_v48 = vadd.f32 %v717_v14, %v142_v45  ;;  %v234_v52 = vmul.f32 %v751_v26, %v38_v15  ;;  %v280_v54 = vmul.f32 %v771_v34, %v38_v15  ;;  %v39_v41 = vld [vmem:[#allocation6 + $0x20] sm:$0xff] }
  0x53   :  { %v76_v1 = vmul.f32 %v690_v5, %v67_v40  ;;  %v113_v55 = vmax.f32 %v105_v46, 0.0  ;;  %v197_v56 = vadd.f32 %v740_v22, %v188_v47  ;;  %v326_v60 = vmul.f32 %v788_v42, %v38_v15 }
  0x54   :  { %v359_v61 = vadd.f32 %v351_v32, %v313_v11  ;;  %v159_v62 = vmax.f32 %v151_v48, 0.0  ;;  %v243_v4 = vadd.f32 %v754_v27, %v234_v52  ;;  %v289_v16 = vadd.f32 %v774_v35, %v280_v54 }
  0x55   :  { %v122_v53 = vmul.f32 %v704_v10, %v113_v55  ;;  %v205_v17 = vmax.f32 %v197_v56, 0.0  ;;  %v335_v20 = vadd.f32 %v791_v43, %v326_v60  ;;  %v372_v24 = vmul.f32 %v805_v50, %v38_v15 }
  0x56   :  { %v405_v29 = vadd.f32 %v397_v37, %v359_v61  ;;  %v168_v33 = vmul.f32 %v729_v18, %v159_v62  ;;  %v251_v36 = vmax.f32 %v243_v4, 0.0  ;;  %v297_v30 = vmax.f32 %v289_v16, 0.0 }
  0x57   :  { %v130_v63 = vadd.f32 %v122_v53, %v76_v1  ;;  %v214_v32 = vmul.f32 %v743_v23, %v205_v17  ;;  %v343_v38 = vmax.f32 %v335_v20, 0.0  ;;  %v381_v0 = vadd.f32 %v808_v51, %v372_v24 }
  0x58   :  { %v451_v45 = vadd.f32 %v443_v44, %v405_v29  ;;  %v260_v40 = vmul.f32 %v765_v31, %v251_v36  ;;  %v306_v46 = vmul.f32 %v784_v39, %v297_v30  ;;  %v418_v47 = vmul.f32 %v818_v58, %v38_v15 }
  0x59   :  { %v176_v11 = vadd.f32 %v168_v33, %v130_v63  ;;  %v352_v37 = vmul.f32 %v802_v49, %v343_v38  ;;  %v389_v48 = vmax.f32 %v381_v0, 0.0  ;;  %v464_v52 = vmul.f32 %v831_v8, %v38_v15 }
  0x5a   :  { %v497_v54 = vadd.f32 %v489_v21, %v451_v45  ;;  %v427_v1 = vadd.f32 %v821_v59, %v418_v47  ;;  %v51_v55 = vmul.f32 %v680_v2, %v39_v41  ;;  %v97_v56 = vmul.f32 %v692_v6, %v39_v41 }
  0x5b   :  { %v222_v44 = vadd.f32 %v214_v32, %v176_v11  ;;  %v398_v60 = vmul.f32 %v815_v57, %v389_v48  ;;  %v473_v61 = vadd.f32 %v834_v12, %v464_v52  ;;  %v143_v62 = vmul.f32 %v715_v13, %v39_v41 }
  0x5c   :  { %v507_v4 = vadd.f32 %v844_v28, %v497_v54  ;;  %v435_v16 = vmax.f32 %v427_v1, 0.0  ;;  %v60_v53 = vadd.f32 %v682_v3, %v51_v55  ;;  %v106_v15 = vadd.f32 %v702_v9, %v97_v56 }
  0x5d   :  { %v268_v21 = vadd.f32 %v260_v40, %v222_v44  ;;  %v481_v17 = vmax.f32 %v473_v61, 0.0  ;;  %v152_v20 = vadd.f32 %v717_v14, %v143_v62  ;;  %v189_v24 = vmul.f32 %v731_v19, %v39_v41 }
  0x5e   :  { %515 = vst [vmem:[#allocation7 + $0x10] sm:$0xff] %v507_v4  ;;  %v444_v29 = vmul.f32 %v828_v7, %v435_v16  ;;  %v68_v33 = vmax.f32 %v60_v53, 0.0  ;;  %v114_v36 = vmax.f32 %v106_v15, 0.0  ;;  %v235_v30 = vmul.f32 %v751_v26, %v39_v41  ;;  %v40_v53 = vld [vmem:[#allocation6 + $0x28] sm:$0xff] }
  0x5f   :  { %v314_v63 = vadd.f32 %v306_v46, %v268_v21  ;;  %v490_v32 = vmul.f32 %v841_v25, %v481_v17  ;;  %v160_v38 = vmax.f32 %v152_v20, 0.0  ;;  %v198_v0 = vadd.f32 %v740_v22, %v189_v24 }
  0x60   :  { %v77_v45 = vmul.f32 %v690_v5, %v68_v33  ;;  %v123_v40 = vmul.f32 %v704_v10, %v114_v36  ;;  %v244_v47 = vadd.f32 %v754_v27, %v235_v30  ;;  %v281_v11 = vmul.f32 %v771_v34, %v39_v41 }
  0x61   :  { %v360_v48 = vadd.f32 %v352_v37, %v314_v63  ;;  %v169_v52 = vmul.f32 %v729_v18, %v160_v38  ;;  %v206_v54 = vmax.f32 %v198_v0, 0.0  ;;  %v327_v1 = vmul.f32 %v788_v42, %v39_v41 }
  0x62   :  { %v131_v46 = vadd.f32 %v123_v40, %v77_v45  ;;  %v252_v55 = vmax.f32 %v244_v47, 0.0  ;;  %v290_v56 = vadd.f32 %v774_v35, %v281_v11  ;;  %v373_v44 = vmul.f32 %v805_v50, %v39_v41 }
  0x63   :  { %v406_v61 = vadd.f32 %v398_v60, %v360_v48  ;;  %v215_v62 = vmul.f32 %v743_v23, %v206_v54  ;;  %v336_v4 = vadd.f32 %v791_v43, %v327_v1  ;;  %v419_v16 = vmul.f32 %v818_v58, %v39_v41 }
  0x64   :  { %v177_v37 = vadd.f32 %v169_v52, %v131_v46  ;;  %v261_v15 = vmul.f32 %v765_v31, %v252_v55  ;;  %v298_v21 = vmax.f32 %v290_v56, 0.0  ;;  %v382_v17 = vadd.f32 %v808_v51, %v373_v44 }
  0x65   :  { %v452_v20 = vadd.f32 %v444_v29, %v406_v61  ;;  %v344_v24 = vmax.f32 %v336_v4, 0.0  ;;  %v428_v33 = vadd.f32 %v821_v59, %v419_v16  ;;  %v465_v36 = vmul.f32 %v831_v8, %v39_v41 }
  0x66   :  { %v223_v60 = vadd.f32 %v215_v62, %v177_v37  ;;  %v307_v30 = vmul.f32 %v784_v39, %v298_v21  ;;  %v390_v63 = vmax.f32 %v382_v17, 0.0  ;;  %v52_v38 = vmul.f32 %v680_v2, %v40_v53 }
  0x67   :  { %v498_v0 = vadd.f32 %v490_v32, %v452_v20  ;;  %v353_v45 = vmul.f32 %v802_v49, %v344_v24  ;;  %v436_v40 = vmax.f32 %v428_v33, 0.0  ;;  %v474_v47 = vadd.f32 %v834_v12, %v465_v36 }
  0x68   :  { %v269_v11 = vadd.f32 %v261_v15, %v223_v60  ;;  %v399_v29 = vmul.f32 %v815_v57, %v390_v63  ;;  %v61_v48 = vadd.f32 %v682_v3, %v52_v38  ;;  %v98_v52 = vmul.f32 %v692_v6, %v40_v53 }
  0x69   :  { %v508_v41 = vadd.f32 %v844_v28, %v498_v0  ;;  %v445_v54 = vmul.f32 %v828_v7, %v436_v40  ;;  %v482_v1 = vmax.f32 %v474_v47, 0.0  ;;  %v144_v46 = vmul.f32 %v715_v13, %v40_v53 }
  0x6a   :  { %v315_v32 = vadd.f32 %v307_v30, %v269_v11  ;;  %v69_v55 = vmax.f32 %v61_v48, 0.0  ;;  %v107_v56 = vadd.f32 %v702_v9, %v98_v52  ;;  %v190_v44 = vmul.f32 %v731_v19, %v40_v53 }
  0x6b   :  { %516 = vst [vmem:[#allocation7 + $0x18] sm:$0xff] %v508_v41  ;;  %v491_v61 = vmul.f32 %v841_v25, %v482_v1  ;;  %v153_v62 = vadd.f32 %v717_v14, %v144_v46  ;;  %v236_v4 = vmul.f32 %v751_v26, %v40_v53  ;;  %v282_v16 = vmul.f32 %v771_v34, %v40_v53  ;;  %v41_v1 = vld [vmem:[#allocation6 + $0x30] sm:$0xff] }
  0x6c   :  { %v361_v37 = vadd.f32 %v353_v45, %v315_v32  ;;  %v78_v15 = vmul.f32 %v690_v5, %v69_v55  ;;  %v115_v21 = vmax.f32 %v107_v56, 0.0  ;;  %v199_v17 = vadd.f32 %v740_v22, %v190_v44 }
  0x6d   :  { %v161_v20 = vmax.f32 %v153_v62, 0.0  ;;  %v245_v24 = vadd.f32 %v754_v27, %v236_v4  ;;  %v291_v33 = vadd.f32 %v774_v35, %v282_v16  ;;  %v328_v36 = vmul.f32 %v788_v42, %v40_v53 }
  0x6e   :  { %v407_v60 = vadd.f32 %v399_v29, %v361_v37  ;;  %v124_v30 = vmul.f32 %v704_v10, %v115_v21  ;;  %v207_v63 = vmax.f32 %v199_v17, 0.0  ;;  %v374_v38 = vmul.f32 %v805_v50, %v40_v53 }
  0x6f   :  { %v170_v0 = vmul.f32 %v729_v18, %v161_v20  ;;  %v253_v45 = vmax.f32 %v245_v24, 0.0  ;;  %v299_v40 = vmax.f32 %v291_v33, 0.0  ;;  %v337_v47 = vadd.f32 %v791_v43, %v328_v36 }
  0x70   :  { %v453_v11 = vadd.f32 %v445_v54, %v407_v60  ;;  %v132_v48 = vadd.f32 %v124_v30, %v78_v15  ;;  %v216_v52 = vmul.f32 %v743_v23, %v207_v63  ;;  %v383_v41 = vadd.f32 %v808_v51, %v374_v38 }
  0x71   :  { %v262_v29 = vmul.f32 %v765_v31, %v253_v45  ;;  %v308_v46 = vmul.f32 %v784_v39, %v299_v40  ;;  %v345_v32 = vmax.f32 %v337_v47, 0.0  ;;  %v420_v55 = vmul.f32 %v818_v58, %v40_v53 }
  0x72   :  { %v499_v56 = vadd.f32 %v491_v61, %v453_v11  ;;  %v178_v44 = vadd.f32 %v170_v0, %v132_v48  ;;  %v391_v62 = vmax.f32 %v383_v41, 0.0  ;;  %v466_v4 = vmul.f32 %v831_v8, %v40_v53 }
  0x73   :  { %v354_v54 = vmul.f32 %v802_v49, %v345_v32  ;;  %v429_v16 = vadd.f32 %v821_v59, %v420_v55  ;;  %v53_v37 = vmul.f32 %v680_v2, %v41_v1  ;;  %v99_v15 = vmul.f32 %v692_v6, %v41_v1 }
  0x74   :  { %v509_v21 = vadd.f32 %v844_v28, %v499_v56  ;;  %v224_v17 = vadd.f32 %v216_v52, %v178_v44  ;;  %v400_v20 = vmul.f32 %v815_v57, %v391_v62  ;;  %v475_v24 = vadd.f32 %v834_v12, %v466_v4 }
  0x75   :  { %v437_v61 = vmax.f32 %v429_v16, 0.0  ;;  %v62_v33 = vadd.f32 %v682_v3, %v53_v37  ;;  %v108_v53 = vadd.f32 %v702_v9, %v99_v15  ;;  %v145_v36 = vmul.f32 %v715_v13, %v41_v1 }
  0x76   :  { %517 = vst [vmem:[#allocation7 + $0x20] sm:$0xff] %v509_v21  ;;  %v270_v60 = vadd.f32 %v262_v29, %v224_v17  ;;  %v483_v30 = vmax.f32 %v475_v24, 0.0  ;;  %v191_v63 = vmul.f32 %v731_v19, %v41_v1  ;;  %v237_v38 = vmul.f32 %v751_v26, %v41_v1  ;;  %v1029_v17 = vld [vmem:[#allocation6 + $0x38] sm:$0xff] }
  0x77   :  { %v446_v0 = vmul.f32 %v828_v7, %v437_v61  ;;  %v70_v45 = vmax.f32 %v62_v33, 0.0  ;;  %v116_v40 = vmax.f32 %v108_v53, 0.0  ;;  %v154_v47 = vadd.f32 %v717_v14, %v145_v36 }
  0x78   :  { %v316_v11 = vadd.f32 %v308_v46, %v270_v60  ;;  %v492_v48 = vmul.f32 %v841_v25, %v483_v30  ;;  %v200_v52 = vadd.f32 %v740_v22, %v191_v63  ;;  %v246_v41 = vadd.f32 %v754_v27, %v237_v38 }
  0x79   :  { %v79_v29 = vmul.f32 %v690_v5, %v70_v45  ;;  %v125_v32 = vmul.f32 %v704_v10, %v116_v40  ;;  %v162_v55 = vmax.f32 %v154_v47, 0.0  ;;  %v283_v56 = vmul.f32 %v771_v34, %v41_v1 }
  0x7a   :  { %v362_v44 = vadd.f32 %v354_v54, %v316_v11  ;;  %v208_v62 = vmax.f32 %v200_v52, 0.0  ;;  %v254_v4 = vmax.f32 %v246_v41, 0.0  ;;  %v329_v16 = vmul.f32 %v788_v42, %v41_v1 }
  0x7b   :  { %v133_v37 = vadd.f32 %v125_v32, %v79_v29  ;;  %v171_v46 = vmul.f32 %v729_v18, %v162_v55  ;;  %v292_v15 = vadd.f32 %v774_v35, %v283_v56  ;;  %v375_v21 = vmul.f32 %v805_v50, %v41_v1 }
  0x7c   :  { %v408_v24 = vadd.f32 %v400_v20, %v362_v44  ;;  %v217_v61 = vmul.f32 %v743_v23, %v208_v62  ;;  %v263_v33 = vmul.f32 %v765_v31, %v254_v4  ;;  %v338_v54 = vadd.f32 %v791_v43, %v329_v16 }
  0x7d   :  { %v179_v53 = vadd.f32 %v171_v46, %v133_v37  ;;  %v300_v36 = vmax.f32 %v292_v15, 0.0  ;;  %v384_v60 = vadd.f32 %v808_v51, %v375_v21  ;;  %v421_v30 = vmul.f32 %v818_v58, %v41_v1 }
  0x7e   :  { %v454_v63 = vadd.f32 %v446_v0, %v408_v24  ;;  %v346_v38 = vmax.f32 %v338_v54, 0.0  ;;  %v467_v45 = vmul.f32 %v831_v8, %v41_v1  ;;  %v54_v40 = vmul.f32 %v680_v2, %v1029_v17 }
  0x7f   :  { %v225_v20 = vadd.f32 %v217_v61, %v179_v53  ;;  %v309_v47 = vmul.f32 %v784_v39, %v300_v36  ;;  %v392_v11 = vmax.f32 %v384_v60, 0.0  ;;  %v430_v52 = vadd.f32 %v821_v59, %v421_v30 }
  0x80   :  { %v500_v41 = vadd.f32 %v492_v48, %v454_v63  ;;  %v355_v29 = vmul.f32 %v802_v49, %v346_v38  ;;  %v476_v32 = vadd.f32 %v834_v12, %v467_v45  ;;  %v63_v55 = vadd.f32 %v682_v3, %v54_v40 }
  0x81   :  { %v271_v0 = vadd.f32 %v263_v33, %v225_v20  ;;  %v401_v56 = vmul.f32 %v815_v57, %v392_v11  ;;  %v438_v1 = vmax.f32 %v430_v52, 0.0  ;;  %v100_v2 = vmul.f32 %v692_v6, %v1029_v17 }
  0x82   :  { %v510_v44 = vadd.f32 %v844_v28, %v500_v41  ;;  %v484_v62 = vmax.f32 %v476_v32, 0.0  ;;  %v71_v4 = vmax.f32 %v63_v55, 0.0  ;;  %v146_v48 = vmul.f32 %v715_v13, %v1029_v17 }
  0x83   :  { %v317_v16 = vadd.f32 %v309_v47, %v271_v0  ;;  %v447_v37 = vmul.f32 %v828_v7, %v438_v1  ;;  %v109_v46 = vadd.f32 %v702_v9, %v100_v2  ;;  %v192_v3 = vmul.f32 %v731_v19, %v1029_v17 }
  0x84   :  { %518 = vst [vmem:[#allocation7 + $0x28] sm:$0xff] %v510_v44  ;;  %v493_v15 = vmul.f32 %v841_v25, %v484_v62  ;;  %v80_v6 = vmul.f32 %v690_v5, %v71_v4  ;;  %v155_v21 = vadd.f32 %v717_v14, %v146_v48  ;;  %v238_v24 = vmul.f32 %v751_v26, %v1029_v17 }
  0x85   :  { %v363_v61 = vadd.f32 %v355_v29, %v317_v16  ;;  %v117_v13 = vmax.f32 %v109_v46, 0.0  ;;  %v201_v33 = vadd.f32 %v740_v22, %v192_v3  ;;  %v284_v9 = vmul.f32 %v771_v34, %v1029_v17 }
  0x86   :  { %v163_v54 = vmax.f32 %v155_v21, 0.0  ;;  %v247_v19 = vadd.f32 %v754_v27, %v238_v24  ;;  %v330_v53 = vmul.f32 %v788_v42, %v1029_v17  ;;  %v376_v5 = vmul.f32 %v805_v50, %v1029_v17 }
  0x87   :  { %v409_v14 = vadd.f32 %v401_v56, %v363_v61  ;;  %v126_v36 = vmul.f32 %v704_v10, %v117_v13  ;;  %v209_v26 = vmax.f32 %v201_v33, 0.0  ;;  %v293_v60 = vadd.f32 %v774_v35, %v284_v9 }
  0x88   :  { %v172_v22 = vmul.f32 %v729_v18, %v163_v54  ;;  %v255_v30 = vmax.f32 %v247_v19, 0.0  ;;  %v339_v34 = vadd.f32 %v791_v43, %v330_v53  ;;  %v385_v63 = vadd.f32 %v808_v51, %v376_v5 }
  0x89   :  { %v455_v27 = vadd.f32 %v447_v37, %v409_v14  ;;  %v134_v38 = vadd.f32 %v126_v36, %v80_v6  ;;  %v218_v42 = vmul.f32 %v743_v23, %v209_v26  ;;  %v301_v45 = vmax.f32 %v293_v60, 0.0 }
  0x8a   :  { %v264_v50 = vmul.f32 %v765_v31, %v255_v30  ;;  %v422_v10 = vmul.f32 %v818_v58, %v1029_v17  ;;  %v347_v35 = vmax.f32 %v339_v34, 0.0  ;;  %v468_v18 = vmul.f32 %v831_v8, %v1029_v17 }
  0x8b   :  { %v501_v40 = vadd.f32 %v493_v15, %v455_v27  ;;  %v180_v20 = vadd.f32 %v172_v22, %v134_v38  ;;  %v393_v47 = vmax.f32 %v385_v63, 0.0  ;;  %v310_v23 = vmul.f32 %v784_v39, %v301_v45 }
  0x8c   :  { %v431_v43 = vadd.f32 %v821_v59, %v422_v10  ;;  %v477_v52 = vadd.f32 %v834_v12, %v468_v18  ;;  %v356_v58 = vmul.f32 %v802_v49, %v347_v35 }
  0x8d   :  { %v511_v51 = vadd.f32 %v844_v28, %v501_v40  ;;  %v226_v11 = vadd.f32 %v218_v42, %v180_v20  ;;  %v402_v32 = vmul.f32 %v815_v57, %v393_v47 }
  0x8e   :  { %v439_v41 = vmax.f32 %v431_v43, 0.0  ;;  %v485_v55 = vmax.f32 %v477_v52, 0.0 }
  0x8f   :  { %519 = vst [vmem:[#allocation7 + $0x30] sm:$0xff] %v511_v51  ;;  %v272_v31 = vadd.f32 %v264_v50, %v226_v11 }
  0x90   :  { %v448_v17 = vmul.f32 %v828_v7, %v439_v41  ;;  %v494_v0 = vmul.f32 %v841_v25, %v485_v55 }
  0x91   :  { %v318_v29 = vadd.f32 %v310_v23, %v272_v31 }
  0x93   :  { %v364_v8 = vadd.f32 %v356_v58, %v318_v29 }
  0x95   :  { %v410_v59 = vadd.f32 %v402_v32, %v364_v8 }
  0x97   :  { %v456_v56 = vadd.f32 %v448_v17, %v410_v59 }
  0x99   :  { %v502_v39 = vadd.f32 %v494_v0, %v456_v56 }
  0x9b   :  { %v512_v12 = vadd.f32 %v844_v28, %v502_v39 }
  0x9d   :  { %520 = vst [vmem:[#allocation7 + $0x38] sm:$0xff] %v512_v12 }
  0x9e   :  { %613 = shalt.err (!%p610_p1)
}
  0x9f   :  { %s614_s8 = scalar_lea.hbm %s1101_s2, 1024 }
  0xa0   :  { %p615_p2 = scmp.ne.s32.totalorder %s1101_s2, %s614_s8  ;;  %p618_p3 = scmp.lt.u32.totalorder %s614_s8, %s1101_s2 }
  0xa2   :  { %p620_p4 = pnand %p618_p3, %p615_p2 }
  0xa4   :  { %623 = shalt.err (!%p620_p4)
}
  0xa5   :  { %530 = dma.vmem_to_hbm [thread:$0]  %s528_s4, 1024, %s1101_s2, [#allocation4]  }
  0xa6   :  { %628 = dma.done.wait [#allocation4], 1024  }
  0xa7   :  { %629 = vsyncadd [#allocation4], 4294966272 }
  0xa8   :  { %534 = vsyncpa [#allocation3], 1 }
  0xa9   :  { %535 = vsyncpa [#allocation4], 1 }
  0xaa   :  { %536 = vsyncpa [#allocation5], 1 }

</bundles_post_ra>
